<compile_context>
chip_gen: v6e
topology: v6e:2x2x1
jax: 0.10.0
libtpu: 0.0.40
codegen_flags: <defaults>
</compile_context>

<pallas_src>
import functools

import jax
import jax.numpy as jnp
from jax import lax
from jax.experimental import pallas as pl
from jax.experimental.pallas import tpu as pltpu


def _round_up(x, m):
    return ((x + m - 1) // m) * m


def _bayesian_linear_kernel(x_ref, mu_ref, sig2_ref, bias_ref, noise_ref, o_ref,
                            mu_acc, var_acc, *, use_bf16_matmul):
    k = pl.program_id(2)

    @pl.when(k == 0)
    def _():
        mu_acc[...] = jnp.zeros_like(mu_acc)
        var_acc[...] = jnp.zeros_like(var_acc)

    x = x_ref[...]            # (tm, tk) fp32
    x2 = x * x                # square in fp32 on the VPU (v5e has no bf16 VPU)
    mu_w = mu_ref[...]        # (tn, tk)   weight mean tile, native (N, K) layout
    sig2_w = sig2_ref[...]    # (tn, tk)   exp(logsigma2) tile, precomputed outside

    if use_bf16_matmul:
        # Narrow only the MXU inputs; accumulation stays fp32.
        x = x.astype(jnp.bfloat16)
        x2 = x2.astype(jnp.bfloat16)
        mu_w = mu_w.astype(jnp.bfloat16)
        sig2_w = sig2_w.astype(jnp.bfloat16)

    # Contract last dims: (tm, tk) . (tn, tk) -> (tm, tn); transpose folded here,
    # so the wrapper never materializes mu.T / sigma2.T in HBM.
    dn = (((1,), (1,)), ((), ()))
    mu_acc[...] += lax.dot_general(x, mu_w, dn, preferred_element_type=jnp.float32)
    var_acc[...] += lax.dot_general(x2, sig2_w, dn, preferred_element_type=jnp.float32)

    @pl.when(k == pl.num_programs(2) - 1)
    def _():
        mu_out = mu_acc[...] + bias_ref[...]
        var_out = var_acc[...] + 1e-8
        o_ref[...] = (mu_out + jnp.sqrt(var_out) * noise_ref[...]).astype(o_ref.dtype)


def bayesian_linear(x, mu, sigma2, bias, noise, *, use_bf16_matmul=False,
                    tm=256, tn=512, tk=512, vmem_limit_bytes=32 * 1024 * 1024):
    """Variational linear forward: mu_out + sqrt(var_out) * noise.

    x:      (B, K)  activations
    mu:     (N, K)  weight mean (kept (N, K); contraction transposed in-kernel)
    sigma2: (N, K)  exp(logsigma2), precomputed once at parameter-prep time
    bias:   (N,)
    noise:  (B, N)  standard-normal sample (stand-in for torch.randn_like)
    """
    B, K = x.shape
    N, K2 = mu.shape
    assert K == K2 and sigma2.shape == (N, K)
    assert bias.shape == (N,) and noise.shape == (B, N)

    # Lane-dense, (8,128)-aligned tiles, clamped to the padded problem size.
    # Weight tiles stay ~1 MiB fp32 so two weight streams double-buffer cleanly
    # under v7x's 64 MiB VMEM.
    tm = min(tm, _round_up(B, 8))
    tn = min(tn, _round_up(N, 128))
    tk = min(tk, _round_up(K, 128))

    Bp, Np, Kp = _round_up(B, tm), _round_up(N, tn), _round_up(K, tk)

    xp = jnp.pad(x.astype(jnp.float32), ((0, Bp - B), (0, Kp - K)))
    mup = jnp.pad(mu.astype(jnp.float32), ((0, Np - N), (0, Kp - K)))
    # Zero-padded sigma2 (NOT exp(0)=1) so padded K columns add no spurious variance.
    sig2p = jnp.pad(sigma2.astype(jnp.float32), ((0, Np - N), (0, Kp - K)))
    biasp = jnp.pad(bias.astype(jnp.float32), (0, Np - N)).reshape(1, Np)
    noisep = jnp.pad(noise.astype(jnp.float32), ((0, Bp - B), (0, Np - N)))

    grid = (Bp // tm, Np // tn, Kp // tk)
    kernel = functools.partial(_bayesian_linear_kernel,
                               use_bf16_matmul=use_bf16_matmul)

    out = pl.pallas_call(
        kernel,
        out_shape=jax.ShapeDtypeStruct((Bp, Np), jnp.float32),
        grid_spec=pltpu.PrefetchScalarGridSpec(
            num_scalar_prefetch=0,
            grid=grid,
            in_specs=[
                pl.BlockSpec((tm, tk), lambda i, j, k: (i, k)),   # x
                pl.BlockSpec((tn, tk), lambda i, j, k: (j, k)),   # mu   (N, K)
                pl.BlockSpec((tn, tk), lambda i, j, k: (j, k)),   # sigma2 (N, K)
                pl.BlockSpec((1, tn), lambda i, j, k: (0, j)),    # bias
                pl.BlockSpec((tm, tn), lambda i, j, k: (i, j)),   # noise
            ],
            out_specs=pl.BlockSpec((tm, tn), lambda i, j, k: (i, j)),
            scratch_shapes=[
                pltpu.VMEM((tm, tn), jnp.float32),   # mean-path accumulator
                pltpu.VMEM((tm, tn), jnp.float32),   # variance-path accumulator
            ],
        ),
        compiler_params=pltpu.CompilerParams(
            dimension_semantics=("parallel", "parallel", "arbitrary"),
            vmem_limit_bytes=vmem_limit_bytes,
        ),
    )(xp, mup, sig2p, biasp, noisep)

    return out[:B, :N]


def reference(x, mu, logsigma2, bias, noise):
    mu_out = x @ mu.T + bias
    var_out = (x * x) @ jnp.exp(logsigma2).T + 1e-8
    return mu_out + jnp.sqrt(var_out) * noise


if __name__ == "__main__":
    # Small shapes consistent with a linear layer: batch=8, in=32, out=16.
    B, K, N = 8, 32, 16
    key = jax.random.PRNGKey(0)
    kx, kmu, kls, knoise = jax.random.split(key, 4)

    x = jax.random.normal(kx, (B, K), dtype=jnp.float32)

    # Deterministic parameter init mirroring reset_parameters():
    #   mu ~ N(0, 1/sqrt(in_features)), logsigma2 ~ N(-9, 0.001), bias = 0
    stdv = 1.0 / jnp.sqrt(jnp.float32(K))
    mu = jax.random.normal(kmu, (N, K), dtype=jnp.float32) * stdv
    logsigma2 = -9.0 + 0.001 * jax.random.normal(kls, (N, K), dtype=jnp.float32)
    bias = jnp.zeros((N,), dtype=jnp.float32)

    # Deterministic stand-in for torch.randn_like(mu_out).
    # TODO(synk): could generate in-kernel via pltpu.prng_seed/stateful_normal
    # to drop one HBM stream; kept external so results are checkable.
    noise = jax.random.normal(knoise, (B, N), dtype=jnp.float32)

    # Parameter prep (done ONCE, cacheable): exp hoisted out of the hot kernel.
    sigma2 = jnp.exp(logsigma2)

    ref = reference(x, mu, logsigma2, bias, noise)

    # fp32 MXU path: bitwise-faithful to the reference semantics.
    out = jax.block_until_ready(bayesian_linear(x, mu, sigma2, bias, noise))
    assert out.shape == (B, N)
    assert jnp.allclose(out, ref, atol=1e-5, rtol=1e-5), "fp32 mismatch vs reference"

    # bf16 weight/activation MXU path (fp32 accumulation): bandwidth-optimized.
    out_bf16 = jax.block_until_ready(
        bayesian_linear(x, mu, sigma2, bias, noise, use_bf16_matmul=True))
    assert jnp.allclose(out_bf16, ref, atol=5e-2, rtol=5e-2), "bf16 mismatch vs reference"

    print("KERNEL_OK")
</pallas_src>

<mosaic_0001>
module attributes {stable_mosaic.version = 11 : i64} {
  func.func @_bayesian_linear_kernel(%arg0: i32, %arg1: i32, %arg2: i32, %arg3: memref<8x128xf32, #tpu.memory_space<vmem>>, %arg4: memref<128x128xf32, #tpu.memory_space<vmem>>, %arg5: memref<128x128xf32, #tpu.memory_space<vmem>>, %arg6: memref<1x128xf32, #tpu.memory_space<vmem>>, %arg7: memref<8x128xf32, #tpu.memory_space<vmem>>, %arg8: memref<8x128xf32, #tpu.memory_space<vmem>>, %arg9: memref<8x128xf32, #tpu.memory_space<vmem>>, %arg10: memref<8x128xf32, #tpu.memory_space<vmem>>) attributes {dimension_semantics = [#tpu.dimension_semantics<parallel>, #tpu.dimension_semantics<parallel>, #tpu.dimension_semantics<arbitrary>], iteration_bounds = array<i64: 1, 1, 1>, scalar_prefetch = 0 : i64, scratch_operands = 2 : i64, tpu.core_type = #tpu.core_type<tc>, window_params = [{transform_indices = @transform_0, window_bounds = array<i64: 8, 128>}, {transform_indices = @transform_1, window_bounds = array<i64: 128, 128>}, {transform_indices = @transform_2, window_bounds = array<i64: 128, 128>}, {transform_indices = @transform_3, window_bounds = array<i64: 1, 128>}, {transform_indices = @transform_4, window_bounds = array<i64: 8, 128>}, {transform_indices = @transform_5, window_bounds = array<i64: 8, 128>}]} {
    %c0_i32 = arith.constant 0 : i32
    %0 = arith.cmpi eq, %arg2, %c0_i32 : i32
    %1 = arith.extui %0 : i1 to i32
    %c0_i32_0 = arith.constant 0 : i32
    %2 = arith.cmpi ne, %1, %c0_i32_0 : i32
    scf.if %2 {
      %cst_17 = arith.constant 0.000000e+00 : f32
      %18 = vector.broadcast %cst_17 : f32 to vector<8x128xf32>
      %c0_18 = arith.constant 0 : index
      %c0_19 = arith.constant 0 : index
      %19 = vector.load %arg9[%c0_18, %c0_19] : memref<8x128xf32, #tpu.memory_space<vmem>>, vector<8x128xf32>
      tpu.vector_store %arg9[%c0_18, %c0_19], %18 {strides = array<i32>} : memref<8x128xf32, #tpu.memory_space<vmem>>, vector<8x128xf32>,
      %cst_20 = arith.constant 0.000000e+00 : f32
      %20 = vector.broadcast %cst_20 : f32 to vector<8x128xf32>
      %c0_21 = arith.constant 0 : index
      %c0_22 = arith.constant 0 : index
      %21 = vector.load %arg10[%c0_21, %c0_22] : memref<8x128xf32, #tpu.memory_space<vmem>>, vector<8x128xf32>
      tpu.vector_store %arg10[%c0_21, %c0_22], %20 {strides = array<i32>} : memref<8x128xf32, #tpu.memory_space<vmem>>, vector<8x128xf32>,
    } else {
    }
    %c0 = arith.constant 0 : index
    %c0_1 = arith.constant 0 : index
    %3 = vector.load %arg3[%c0, %c0_1] : memref<8x128xf32, #tpu.memory_space<vmem>>, vector<8x128xf32>
    %4 = arith.mulf %3, %3 : vector<8x128xf32>
    %c0_2 = arith.constant 0 : index
    %c0_3 = arith.constant 0 : index
    %5 = vector.load %arg4[%c0_2, %c0_3] : memref<128x128xf32, #tpu.memory_space<vmem>>, vector<128x128xf32>
    %c0_4 = arith.constant 0 : index
    %c0_5 = arith.constant 0 : index
    %6 = vector.load %arg5[%c0_4, %c0_5] : memref<128x128xf32, #tpu.memory_space<vmem>>, vector<128x128xf32>
    %c0_6 = arith.constant 0 : index
    %c0_7 = arith.constant 0 : index
    %7 = vector.load %arg9[%c0_6, %c0_7] : memref<8x128xf32, #tpu.memory_space<vmem>>, vector<8x128xf32>
    %cst = arith.constant dense<0.000000e+00> : vector<8x128xf32>
    %8 = tpu.matmul %3, %5, %cst {dimension_numbers = #tpu.dot_dimension_numbers<[1], [1], [0], [0], [0, 0, 1, 0], [], []>} : vector<8x128xf32>, vector<128x128xf32>, vector<8x128xf32> -> vector<8x128xf32>
    %9 = arith.addf %7, %8 : vector<8x128xf32>
    %c0_8 = arith.constant 0 : index
    %c0_9 = arith.constant 0 : index
    %10 = vector.load %arg9[%c0_8, %c0_9] : memref<8x128xf32, #tpu.memory_space<vmem>>, vector<8x128xf32>
    tpu.vector_store %arg9[%c0_8, %c0_9], %9 {strides = array<i32>} : memref<8x128xf32, #tpu.memory_space<vmem>>, vector<8x128xf32>,
    %c0_10 = arith.constant 0 : index
    %c0_11 = arith.constant 0 : index
    %11 = vector.load %arg10[%c0_10, %c0_11] : memref<8x128xf32, #tpu.memory_space<vmem>>, vector<8x128xf32>
    %cst_12 = arith.constant dense<0.000000e+00> : vector<8x128xf32>
    %12 = tpu.matmul %4, %6, %cst_12 {dimension_numbers = #tpu.dot_dimension_numbers<[1], [1], [0], [0], [0, 0, 1, 0], [], []>} : vector<8x128xf32>, vector<128x128xf32>, vector<8x128xf32> -> vector<8x128xf32>
    %13 = arith.addf %11, %12 : vector<8x128xf32>
    %c0_13 = arith.constant 0 : index
    %c0_14 = arith.constant 0 : index
    %14 = vector.load %arg10[%c0_13, %c0_14] : memref<8x128xf32, #tpu.memory_space<vmem>>, vector<8x128xf32>
    tpu.vector_store %arg10[%c0_13, %c0_14], %13 {strides = array<i32>} : memref<8x128xf32, #tpu.memory_space<vmem>>, vector<8x128xf32>,
    %c0_i32_15 = arith.constant 0 : i32
    %15 = arith.cmpi eq, %arg2, %c0_i32_15 : i32
    %16 = arith.extui %15 : i1 to i32
    %c0_i32_16 = arith.constant 0 : i32
    %17 = arith.cmpi ne, %16, %c0_i32_16 : i32
    scf.if %17 {
      %c0_17 = arith.constant 0 : index
      %c0_18 = arith.constant 0 : index
      %18 = vector.load %arg9[%c0_17, %c0_18] : memref<8x128xf32, #tpu.memory_space<vmem>>, vector<8x128xf32>
      %c0_19 = arith.constant 0 : index
      %c0_20 = arith.constant 0 : index
      %19 = vector.load %arg6[%c0_19, %c0_20] : memref<1x128xf32, #tpu.memory_space<vmem>>, vector<1x128xf32>
      %20 = vector.broadcast %19 : vector<1x128xf32> to vector<8x128xf32>
      %21 = arith.addf %18, %20 : vector<8x128xf32>
      %c0_21 = arith.constant 0 : index
      %c0_22 = arith.constant 0 : index
      %22 = vector.load %arg10[%c0_21, %c0_22] : memref<8x128xf32, #tpu.memory_space<vmem>>, vector<8x128xf32>
      %cst_23 = arith.constant 9.99999993E-9 : f32
      %23 = vector.broadcast %cst_23 : f32 to vector<8x128xf32>
      %24 = arith.addf %22, %23 : vector<8x128xf32>
      %25 = math.sqrt %24 : vector<8x128xf32>
      %c0_24 = arith.constant 0 : index
      %c0_25 = arith.constant 0 : index
      %26 = vector.load %arg7[%c0_24, %c0_25] : memref<8x128xf32, #tpu.memory_space<vmem>>, vector<8x128xf32>
      %27 = arith.mulf %25, %26 : vector<8x128xf32>
      %28 = arith.addf %21, %27 : vector<8x128xf32>
      %c0_26 = arith.constant 0 : index
      %c0_27 = arith.constant 0 : index
      %29 = vector.load %arg8[%c0_26, %c0_27] : memref<8x128xf32, #tpu.memory_space<vmem>>, vector<8x128xf32>
      tpu.vector_store %arg8[%c0_26, %c0_27], %28 {strides = array<i32>} : memref<8x128xf32, #tpu.memory_space<vmem>>, vector<8x128xf32>,
    } else {
    }
    return
  }
  func.func @transform_0(%arg0: i32, %arg1: i32, %arg2: i32) -> (i32, i32) {
    %c0_i32 = arith.constant 0 : i32
    return %arg0, %arg2 : i32, i32
  }
  func.func @transform_1(%arg0: i32, %arg1: i32, %arg2: i32) -> (i32, i32) {
    %c0_i32 = arith.constant 0 : i32
    return %arg1, %arg2 : i32, i32
  }
  func.func @transform_2(%arg0: i32, %arg1: i32, %arg2: i32) -> (i32, i32) {
    %c0_i32 = arith.constant 0 : i32
    return %arg1, %arg2 : i32, i32
  }
  func.func @transform_3(%arg0: i32, %arg1: i32, %arg2: i32) -> (i32, i32) {
    %c0_i32 = arith.constant 0 : i32
    %c0_i32_0 = arith.constant 0 : i32
    return %c0_i32, %arg1 : i32, i32
  }
  func.func @transform_4(%arg0: i32, %arg1: i32, %arg2: i32) -> (i32, i32) {
    %c0_i32 = arith.constant 0 : i32
    return %arg0, %arg1 : i32, i32
  }
  func.func @transform_5(%arg0: i32, %arg1: i32, %arg2: i32) -> (i32, i32) {
    %c0_i32 = arith.constant 0 : i32
    return %arg0, %arg1 : i32, i32
  }
}

</mosaic_0001>

<bundles_post_ra>
// kernel: tpu_custom_call.1
= control target key start
LH: loop header
LB: loop body
LE: loop exit
PB: predicated region body
PF: predicated region fallthrough
CT: control target
= control target key end

     0   :  { %10 = vsyncpa [#allocation5], 0  ;;  %s615_s0 = inlined_call_operand.hbm [shape: f32[8,128], index: 0, kind: input, shape index: {}]   ;;  %s616_s1 = inlined_call_operand.hbm [shape: f32[128,128], index: 1, kind: input, shape index: {}]   ;;  %s617_s2 = inlined_call_operand.hbm [shape: f32[128,128], index: 2, kind: input, shape index: {}]   ;;  %s618_s3 = inlined_call_operand.vmem [shape: f32[1,128], index: 3, kind: input, shape index: {}]   ;;  %s619_s4 = inlined_call_operand.hbm [shape: f32[8,128], index: 4, kind: input, shape index: {}]   ;;  %s620_s5 = inlined_call_operand.hbm [shape: f32[8,128], index: 5, kind: output, shape index: {}]  }
   0x1   :  { %11 = vsyncpa [#allocation8], 0 }
   0x2   :  { %12 = vsyncpa [#allocation11], 0 }
   0x3   :  { %13 = vsyncpa [#allocation6], 0  ;;  %s524_s18 = smov [#allocation7]  }
   0x4   :  { %s29_s19 = sshll.u32 %s524_s18, 4  ;;  %s30_s19 = int_to_ptr.vmem [resolvable:$true] %s29_s19 }
   0x5   :  { %s424_s20 = scalar_lea.vmem %s30_s19, 2048  ;;  %p429_p1 = scmp.lt.s32.totalorder %s30_s19, %s30_s19 }
   0x6   :  { %p425_p0 = scmp.ne.s32.totalorder %s30_s19, %s424_s20  ;;  %p430_p2 = scmp.lt.s32.totalorder %s424_s20, %s424_s20 }
   0x8   :  { %p431_p3 = por %p430_p2, %p429_p1 }
   0xa   :  { %p432_p4 = pnand %p431_p3, %p425_p0 }
   0xc   :  { %435 = shalt.err (!%p432_p4)
}
   0xd   :  { %s525_s21 = smov 128   ;;  %s526_s22 = smov 8  }
   0xe   :  { %35 = dma.hbm_to_vmem [thread:$0]  %s616_s1, 2048, %s30_s19, [#allocation8], %s525_s21, %s525_s21, %s526_s22  }
   0xf   :  { %s527_s25 = smov [#allocation4]   ;;  %s528_s27 = smov [#allocation9]  }
  0x10   :  { %s20_s26 = sshll.u32 %s527_s25, 4  ;;  %s41_s28 = sshll.u32 %s528_s27, 4  ;;  %s21_s26 = int_to_ptr.vmem [resolvable:$true] %s20_s26  ;;  %s42_s28 = int_to_ptr.vmem [resolvable:$true] %s41_s28 }
  0x11   :  { %s444_s29 = scalar_lea.vmem %s21_s26, 128  ;;  %p449_p6 = scmp.lt.s32.totalorder %s21_s26, %s21_s26 }
  0x12   :  { %p445_p5 = scmp.ne.s32.totalorder %s21_s26, %s444_s29  ;;  %p450_p7 = scmp.lt.s32.totalorder %s444_s29, %s444_s29 }
  0x14   :  { %p451_p8 = por %p450_p7, %p449_p6 }
  0x16   :  { %p452_p9 = pnand %p451_p8, %p445_p5 }
  0x18   :  { %455 = shalt.err (!%p452_p9)
}
  0x19   :  { %23 = dma.hbm_to_vmem [thread:$0]  %s615_s0, 128, %s21_s26, [#allocation5]  }
  0x1a   :  { %s464_s7 = scalar_lea.vmem %s42_s28, 2048  ;;  %p469_p11 = scmp.lt.s32.totalorder %s42_s28, %s42_s28 }
  0x1b   :  { %p465_p10 = scmp.ne.s32.totalorder %s42_s28, %s464_s7  ;;  %p470_p12 = scmp.lt.s32.totalorder %s464_s7, %s464_s7 }
  0x1d   :  { %p471_p13 = por %p470_p12, %p469_p11 }
  0x1f   :  { %p472_p0 = pnand %p471_p13, %p465_p10 }
  0x21   :  { %475 = shalt.err (!%p472_p0)
}
  0x22   :  { %47 = dma.hbm_to_vmem [thread:$0]  %s617_s2, 2048, %s42_s28, [#allocation8], %s525_s21, %s525_s21, %s526_s22  }
  0x23   :  { %s529_s9 = smov [#allocation10]  }
  0x24   :  { %s56_s10 = sshll.u32 %s529_s9, 4  ;;  %s57_s10 = int_to_ptr.vmem [resolvable:$true] %s56_s10 }
  0x25   :  { %s484_s11 = scalar_lea.vmem %s57_s10, 128  ;;  %p489_p2 = scmp.lt.s32.totalorder %s57_s10, %s57_s10 }
  0x26   :  { %p485_p1 = scmp.ne.s32.totalorder %s57_s10, %s484_s11  ;;  %p490_p3 = scmp.lt.s32.totalorder %s484_s11, %s484_s11 }
  0x28   :  { %p491_p4 = por %p490_p3, %p489_p2 }
  0x2a   :  { %p492_p5 = pnand %p491_p4, %p485_p1 }
  0x2c   :  { %495 = shalt.err (!%p492_p5)
}
  0x2d   :  { %59 = dma.hbm_to_vmem [thread:$0]  %s619_s4, 128, %s57_s10, [#allocation11]  }
  0x2e   :  { %516 = dma.done.wait [#allocation5], 128  }
  0x2f   :  { %517 = vsyncadd [#allocation5], 4294967168 }
  0x30   :  { %518 = dma.done.wait [#allocation8], 4096  }
  0x31   :  { %519 = vsyncadd [#allocation8], 4294963200 }
  0x32   :  { %520 = dma.done.wait [#allocation11], 128  }
  0x33   :  { %521 = vsyncadd [#allocation11], 4294967168  ;;  %v530_v0 = vmov 0.0   ;;  %vm531_vm0 = vmmov 0   ;;  %v111_v1 = vld [vmem:[#allocation9 + $0x78] sm:$0xff]  ;;  %v110_v3 = vld [vmem:[#allocation9 + $0x70] sm:$0xff] }
  0x34   :  { %370 = vmatprep.subr.mxu1 %v530_v0  ;;  %335 = vmatprep.subr.mxu0 %v530_v0  ;;  %v95_v2 = vld [vmem:[#allocation7 + $0x78] sm:$0xff]  ;;  %v94_v4 = vld [vmem:[#allocation7 + $0x70] sm:$0xff]  ;;  %v109_v5 = vld [vmem:[#allocation9 + $0x68] sm:$0xff]  ;;  %s532_s13 = smov [#allocation12]  }
  0x35   :  { %402 = vmatprep.mubr.msk.f32.mxu1 %vm531_vm0, %v530_v0  ;;  %367 = vmatprep.mubr.msk.f32.mxu0 %vm531_vm0, %v530_v0  ;;  %v93_v6 = vld [vmem:[#allocation7 + $0x68] sm:$0xff]  ;;  %v108_v7 = vld [vmem:[#allocation9 + $0x60] sm:$0xff]  ;;  %v107_v9 = vld [vmem:[#allocation9 + $0x58] sm:$0xff]  ;;  %s289_s14 = sshll.u32 %s532_s13, 4  ;;  %s290_s14 = int_to_ptr.vmem [resolvable:$true] %s289_s14 }
  0x36   :  { %371 = vmatpush3.xpose.msra.mxu1 %v111_v1  ;;  %336 = vmatpush3.xpose.msra.mxu0 %v95_v2  ;;  %v92_v8 = vld [vmem:[#allocation7 + $0x60] sm:$0xff]  ;;  %v91_v10 = vld [vmem:[#allocation7 + $0x58] sm:$0xff]  ;;  %v106_v11 = vld [vmem:[#allocation9 + $0x50] sm:$0xff]  ;;  %s496_s15 = scalar_lea.vmem %s290_s14, 128  ;;  %p501_p7 = scmp.lt.s32.totalorder %s290_s14, %s290_s14 }
  0x37   :  { %372 = vmatprep.subr.mxu1 %v530_v0  ;;  %337 = vmatprep.subr.mxu0 %v530_v0  ;;  %v90_v12 = vld [vmem:[#allocation7 + $0x50] sm:$0xff]  ;;  %v105_v13 = vld [vmem:[#allocation9 + $0x48] sm:$0xff]  ;;  %v104_v15 = vld [vmem:[#allocation9 + $0x40] sm:$0xff]  ;;  %p497_p6 = scmp.ne.s32.totalorder %s290_s14, %s496_s15  ;;  %p502_p8 = scmp.lt.s32.totalorder %s496_s15, %s496_s15 }
  0x38   :  { %v89_v14 = vld [vmem:[#allocation7 + $0x48] sm:$0xff]  ;;  %v88_v16 = vld [vmem:[#allocation7 + $0x40] sm:$0xff]  ;;  %v103_v17 = vld [vmem:[#allocation9 + $0x38] sm:$0xff] }
  0x39   :  { %v87_v18 = vld [vmem:[#allocation7 + $0x38] sm:$0xff]  ;;  %v102_v19 = vld [vmem:[#allocation9 + $0x30] sm:$0xff]  ;;  %v101_v21 = vld [vmem:[#allocation9 + $0x28] sm:$0xff]  ;;  %p503_p9 = por %p502_p8, %p501_p7 }
  0x3a   :  { %373 = vmatpush3.xpose.msra.mxu1 %v110_v3  ;;  %338 = vmatpush3.xpose.msra.mxu0 %v94_v4  ;;  %v86_v20 = vld [vmem:[#allocation7 + $0x30] sm:$0xff]  ;;  %v85_v22 = vld [vmem:[#allocation7 + $0x28] sm:$0xff]  ;;  %v100_v23 = vld [vmem:[#allocation9 + $0x20] sm:$0xff] }
  0x3b   :  { %374 = vmatprep.subr.mxu1 %v530_v0  ;;  %339 = vmatprep.subr.mxu0 %v530_v0  ;;  %v84_v24 = vld [vmem:[#allocation7 + $0x20] sm:$0xff]  ;;  %v99_v25 = vld [vmem:[#allocation9 + $0x18] sm:$0xff]  ;;  %v98_v27 = vld [vmem:[#allocation9 + $0x10] sm:$0xff]  ;;  %p504_p10 = pnand %p503_p9, %p497_p6 }
  0x3c   :  { %v83_v26 = vld [vmem:[#allocation7 + $0x18] sm:$0xff]  ;;  %v82_v28 = vld [vmem:[#allocation7 + $0x10] sm:$0xff]  ;;  %v97_v29 = vld [vmem:[#allocation9 + $0x8] sm:$0xff] }
  0x3d   :  { %v81_v30 = vld [vmem:[#allocation7 + $0x8] sm:$0xff]  ;;  %v78_v31 = vld [vmem:[#allocation4] sm:$0xff]  ;;  %v96_v32 = vld [vmem:[#allocation9] sm:$0xff] }
  0x3e   :  { %375 = vmatpush3.xpose.msra.mxu1 %v109_v5  ;;  %340 = vmatpush3.xpose.msra.mxu0 %v93_v6  ;;  %v80_v33 = vld [vmem:[#allocation7] sm:$0xff]  ;;  %v79_v34 = vmul.f32 %v78_v31, %v78_v31  ;;  %v300_v41 = vld [vmem:[%s618_s3] ss:$0 sm:$0xff] }
  0x3f   :  { %376 = vmatprep.subr.mxu1 %v530_v0  ;;  %341 = vmatprep.subr.mxu0 %v530_v0  ;;  %v279_v44 = vld [vmem:[#allocation10] sm:$0xff] }
  0x42   :  { %377 = vmatpush3.xpose.msra.mxu1 %v108_v7  ;;  %342 = vmatpush3.xpose.msra.mxu0 %v92_v8 }
  0x43   :  { %378 = vmatprep.subr.mxu1 %v530_v0  ;;  %343 = vmatprep.subr.mxu0 %v530_v0 }
  0x46   :  { %379 = vmatpush3.xpose.msra.mxu1 %v107_v9  ;;  %344 = vmatpush3.xpose.msra.mxu0 %v91_v10 }
  0x47   :  { %380 = vmatprep.subr.mxu1 %v530_v0  ;;  %345 = vmatprep.subr.mxu0 %v530_v0 }
  0x4a   :  { %381 = vmatpush3.xpose.msra.mxu1 %v106_v11  ;;  %346 = vmatpush3.xpose.msra.mxu0 %v90_v12 }
  0x4b   :  { %382 = vmatprep.subr.mxu1 %v530_v0  ;;  %347 = vmatprep.subr.mxu0 %v530_v0 }
  0x4e   :  { %383 = vmatpush3.xpose.msra.mxu1 %v105_v13  ;;  %348 = vmatpush3.xpose.msra.mxu0 %v89_v14 }
  0x4f   :  { %384 = vmatprep.subr.mxu1 %v530_v0  ;;  %349 = vmatprep.subr.mxu0 %v530_v0 }
  0x52   :  { %385 = vmatpush3.xpose.msra.mxu1 %v104_v15  ;;  %350 = vmatpush3.xpose.msra.mxu0 %v88_v16 }
  0x53   :  { %386 = vmatprep.subr.mxu1 %v530_v0  ;;  %351 = vmatprep.subr.mxu0 %v530_v0 }
  0x56   :  { %387 = vmatpush3.xpose.msra.mxu1 %v103_v17  ;;  %352 = vmatpush3.xpose.msra.mxu0 %v87_v18 }
  0x57   :  { %388 = vmatprep.subr.mxu1 %v530_v0  ;;  %353 = vmatprep.subr.mxu0 %v530_v0 }
  0x5a   :  { %389 = vmatpush3.xpose.msra.mxu1 %v102_v19  ;;  %354 = vmatpush3.xpose.msra.mxu0 %v86_v20 }
  0x5b   :  { %390 = vmatprep.subr.mxu1 %v530_v0  ;;  %355 = vmatprep.subr.mxu0 %v530_v0 }
  0x5e   :  { %391 = vmatpush3.xpose.msra.mxu1 %v101_v21  ;;  %356 = vmatpush3.xpose.msra.mxu0 %v85_v22 }
  0x5f   :  { %392 = vmatprep.subr.mxu1 %v530_v0  ;;  %357 = vmatprep.subr.mxu0 %v530_v0 }
  0x62   :  { %393 = vmatpush3.xpose.msra.mxu1 %v100_v23  ;;  %358 = vmatpush3.xpose.msra.mxu0 %v84_v24 }
  0x63   :  { %394 = vmatprep.subr.mxu1 %v530_v0  ;;  %359 = vmatprep.subr.mxu0 %v530_v0 }
  0x66   :  { %395 = vmatpush3.xpose.msra.mxu1 %v99_v25  ;;  %360 = vmatpush3.xpose.msra.mxu0 %v83_v26 }
  0x67   :  { %396 = vmatprep.subr.mxu1 %v530_v0  ;;  %361 = vmatprep.subr.mxu0 %v530_v0 }
  0x6a   :  { %397 = vmatpush3.xpose.msra.mxu1 %v98_v27  ;;  %362 = vmatpush3.xpose.msra.mxu0 %v82_v28 }
  0x6b   :  { %398 = vmatprep.subr.mxu1 %v530_v0  ;;  %363 = vmatprep.subr.mxu0 %v530_v0 }
  0x6e   :  { %399 = vmatpush3.xpose.msra.mxu1 %v97_v29  ;;  %364 = vmatpush3.xpose.msra.mxu0 %v81_v30 }
  0x6f   :  { %400 = vmatprep.subr.mxu1 %v530_v0  ;;  %365 = vmatprep.subr.mxu0 %v530_v0 }
  0x72   :  { %401 = vmatpush3.xpose.msra.mxu1 %v96_v32  ;;  %366 = vmatpush3.xpose.msra.mxu0 %v80_v33 }
  0x75   :  { %403 = vmatmul.mubr.f32.vlgmr.msra.gmra.mxu1 %v79_v34  ;;  %368 = vmatmul.mubr.f32.vlgmr.msra.gmra.mxu0 %v78_v31 }
 0x135   :  { %v252_v35 = vpop.f32.mrf.mxu1  ;;  %v179_v37 = vpop.f32.mrf.mxu0 }
 0x136   :  { %v271_v36 = vadd.f32 1e-08, %v252_v35  ;;  %v269_v45 = vadd.f32 %v300_v41, %v179_v37 }
 0x137   :  { %v404_v38 = vpop.f32.mrf.mxu1  ;;  %v369_v39 = vpop.f32.mrf.mxu0 }
 0x138   :  { %414 = vrsqrt.f32 %v271_v36  ;;  %vm274_vm1 = vcmp.eq.f32.partialorder %v271_v36, inf  ;;  %v277_v43 = vand.u32 2147483648, %v271_v36  ;;  %vm276_vm2 = vcmp.eq.f32.partialorder %v271_v36, 0.0 }
 0x145   :  { %v415_v40 = vpop.eup %414 }
 0x146   :  { %v273_v42 = vmul.f32 %v415_v40, %v271_v36 }
 0x148   :  { %v275_v46 = vsel %vm274_vm1, %v271_v36, %v273_v42 }
 0x149   :  { %v278_v47 = vsel %vm276_vm2, %v277_v43, %v275_v46 }
 0x14a   :  { %v280_v48 = vmul.f32 %v279_v44, %v278_v47 }
 0x14c   :  { %v281_v49 = vadd.f32 %v280_v48, %v269_v45 }
 0x14e   :  { %282 = vst [vmem:[#allocation12] sm:$0xff] %v281_v49 }
 0x14f   :  { %507 = shalt.err (!%p504_p10)
}
 0x150   :  { %292 = dma.vmem_to_hbm [thread:$0]  %s290_s14, 128, %s620_s5, [#allocation6]  }
 0x151   :  { %522 = dma.done.wait [#allocation6], 128  }
 0x152   :  { %523 = vsyncadd [#allocation6], 4294967168 }
 0x153   :  { %296 = vsyncpa [#allocation5], 1 }
 0x154   :  { %297 = vsyncpa [#allocation8], 1 }
 0x155   :  { %298 = vsyncpa [#allocation11], 1 }
 0x156   :  { %299 = vsyncpa [#allocation6], 1 }

</bundles_post_ra>
